<compile_context>
chip_gen: v6e
topology: v6e:2x2x1
jax: 0.10.0
libtpu: 0.0.40
codegen_flags: <defaults>
</compile_context>

<pallas_src>
import functools

import jax
import jax.numpy as jnp
from jax import lax
from jax.experimental import pallas as pl
from jax.experimental.pallas import tpu as pltpu


def _tv_kernel(x_ref, wscale_ref, out_ref, acc_ref, *,
               n_planes: int, block_p: int, width: int, plane_len: int,
               inv_ch: float, use_h: bool, use_w: bool, need_row_mask: bool):
    s = pl.program_id(1)

    @pl.when(s == 0)
    def _():
        acc_ref[...] = jnp.zeros_like(acc_ref)

    g = block_p // 8
    # (P, L) native-dtype block -> f32 -> layout-free split of the sublane-major
    # plane axis into (P//8, 8, L) groups.
    x = x_ref[...].astype(jnp.float32).reshape(g, 8, plane_len)

    row_total = jnp.zeros((g, 8, 1), jnp.float32)
    if use_h:
        # H-neighbor of flattened position j is j + W; all (H-1)*W pairs valid.
        dh = x[:, :, width:] - x[:, :, : plane_len - width]
        row_total = row_total + jnp.sum(dh * dh, axis=2, keepdims=True) * inv_ch
    if use_w:
        # W-neighbor of j is j + 1; pairs crossing a row end are zeroed by
        # wscale, which also folds in 1/count_w.  (8, L-1) broadcasts over the
        # leading group axis only (no sublane broadcast in the hot multiply).
        dw = x[:, :, 1:] - x[:, :, : plane_len - 1]
        row_total = row_total + jnp.sum(dw * dw * wscale_ref[...], axis=2,
                                        keepdims=True)

    if need_row_mask:
        # Only the last block can stick past N planes; mask AFTER the per-row
        # reduce with a select so undefined padding rows (even NaN) are dropped.
        slot = pl.program_id(0) * pl.num_programs(1) + s
        rows = (slot * block_p
                + lax.broadcasted_iota(jnp.int32, (g, 8, 1), 0) * 8
                + lax.broadcasted_iota(jnp.int32, (g, 8, 1), 1))
        row_total = jnp.where(rows < n_planes, row_total, 0.0)

    # (P//8, 8, 1) -> (8, 1) -> (1, 1): tiny VALU adds + one sublane reduce.
    acc_ref[...] += row_total.sum(axis=0).sum(axis=0, keepdims=True)

    @pl.when(s == pl.num_programs(1) - 1)
    def _():
        out_ref[...] = acc_ref[...].reshape(out_ref.shape)


def _round_up(a: int, b: int) -> int:
    return ((a + b - 1) // b) * b


def _cdiv(a: int, b: int) -> int:
    return (a + b - 1) // b


def _num_tensorcores() -> int:
    """Best-effort TensorCore count; defaults to 1 (right for v5e/v6e)."""
    try:
        info = pltpu.get_tpu_info()
    except Exception:
        return 1
    for name in ("num_cores", "num_tensorcores", "tensorcores_per_chip",
                 "cores_per_chip"):
        v = getattr(info, name, None)
        if isinstance(v, int) and v > 0:
            return v
    return 1


def tv_loss(x, tv_loss_weight: float = 1.0):
    """Pallas implementation of TVLoss.forward for NCHW input x."""
    B, C, H, W = x.shape
    N = B * C
    L = H * W

    count_h = C * (H - 1) * W            # matches _tensor_size(x[:, :, 1:, :])
    count_w = C * H * (W - 1)            # matches _tensor_size(x[:, :, :, 1:])
    # NOTE: when H == 1 or W == 1 the PyTorch forward divides by zero
    # (inf/nan); here the degenerate term is dropped instead (documented
    # behavioral divergence).
    use_h = count_h > 0
    use_w = count_w > 0
    inv_ch = (1.0 / count_h) if use_h else 0.0
    inv_cw = (1.0 / count_w) if use_w else 0.0

    # W-direction validity mask over flattened positions j in [0, L-1):
    # valid iff j is not the last column of its row; folds in 1/count_w.
    if use_w:
        j = jnp.arange(L - 1, dtype=jnp.int32)
        wscale = jnp.where(j % W != W - 1, jnp.float32(inv_cw), jnp.float32(0.0))
        wscale = jnp.broadcast_to(wscale.reshape(1, L - 1), (8, L - 1))
    else:
        wscale = jnp.zeros((8, 1), jnp.float32)   # dummy, never read

    # --- tiling --------------------------------------------------------------
    itemsize = jnp.dtype(x.dtype).itemsize
    sub = 8 * max(1, 4 // itemsize)          # sublane packing: 8 f32, 16 bf16, 32 i8
    target_f32_block_bytes = 4 * 1024 * 1024  # ~4 MiB f32-equivalent per step
    rows_budget = max(sub, (target_f32_block_bytes // max(1, L * 4)) // sub * sub)
    P = min(_round_up(N, sub), rows_budget)
    # TODO(synk): planes so large that even `sub` of them blow the VMEM budget
    # (e.g. 4K images) need H-chunked tiling with a 1-row halo; not implemented.

    n_blocks = _cdiv(N, P)
    # Chunk split only pays off when both TensorCores can take one (v7x).
    n_chunks = 2 if (_num_tensorcores() >= 2 and n_blocks >= 2
                     and n_blocks % 2 == 0) else 1
    steps = n_blocks // n_chunks

    xr = x.reshape(N, L)                     # metadata reshape, native dtype, no pad

    kernel = functools.partial(
        _tv_kernel,
        n_planes=N, block_p=P, width=W, plane_len=L,
        inv_ch=inv_ch, use_h=use_h, use_w=use_w,
        need_row_mask=(n_blocks * P != N))

    partials = pl.pallas_call(
        kernel,
        out_shape=jax.ShapeDtypeStruct((n_chunks, 1, 1), jnp.float32),
        grid_spec=pltpu.PrefetchScalarGridSpec(
            num_scalar_prefetch=0,
            grid=(n_chunks, steps),
            in_specs=[
                pl.BlockSpec((P, L), lambda c, s: (c * steps + s, 0)),
                pl.BlockSpec(wscale.shape, lambda c, s: (0, 0)),
            ],
            out_specs=pl.BlockSpec((1, 1, 1), lambda c, s: (c, 0, 0)),
            scratch_shapes=[pltpu.VMEM((1, 1), jnp.float32)],
        ),
        compiler_params=pltpu.CompilerParams(
            dimension_semantics=("parallel", "arbitrary"),
            vmem_limit_bytes=48 * 1024 * 1024,
        ),
    )(xr, wscale)

    total = jnp.sum(partials)                # = h_tv/count_h + w_tv/count_w
    return tv_loss_weight * 2.0 * total / B


def _tv_loss_ref(x, tv_loss_weight: float = 1.0):
    """Pure-JAX reference matching the PyTorch forward exactly."""
    B, C, H, W = x.shape
    x = x.astype(jnp.float32)
    count_h = C * (H - 1) * W
    count_w = C * H * (W - 1)
    h_tv = jnp.sum((x[:, :, 1:, :] - x[:, :, : H - 1, :]) ** 2)
    w_tv = jnp.sum((x[:, :, :, 1:] - x[:, :, :, : W - 1]) ** 2)
    return tv_loss_weight * 2.0 * (h_tv / count_h + w_tv / count_w) / B


if __name__ == "__main__":
    key = jax.random.PRNGKey(0)
    x = jax.random.normal(key, (2, 4, 16, 16), dtype=jnp.float32)  # NCHW

    out = jax.block_until_ready(tv_loss(x, tv_loss_weight=1.0))

    ref = _tv_loss_ref(x, tv_loss_weight=1.0)
    assert jnp.allclose(out, ref, rtol=1e-5, atol=1e-5), (out, ref)

    print("KERNEL_OK")
</pallas_src>

<mosaic_0001>
module attributes {stable_mosaic.version = 11 : i64} {
  func.func @_tv_kernel(%arg0: i32, %arg1: i32, %arg2: memref<8x256xf32, #tpu.memory_space<vmem>>, %arg3: memref<8x255xf32, #tpu.memory_space<vmem>>, %arg4: memref<1x1x1xf32, #tpu.memory_space<vmem>>, %arg5: memref<1x1xf32, #tpu.memory_space<vmem>>) attributes {dimension_semantics = [#tpu.dimension_semantics<parallel>, #tpu.dimension_semantics<arbitrary>], iteration_bounds = array<i64: 1, 1>, scalar_prefetch = 0 : i64, scratch_operands = 1 : i64, tpu.core_type = #tpu.core_type<tc>, window_params = [{transform_indices = @transform_0, window_bounds = array<i64: 8, 256>}, {pipeline_mode = #tpu.pipeline_mode<synchronous>, transform_indices = @transform_1, window_bounds = array<i64: 8, 255>}, {transform_indices = @transform_2, window_bounds = array<i64: 1, 1, 1>}]} {
    %c0_i32 = arith.constant 0 : i32
    %0 = arith.cmpi eq, %arg1, %c0_i32 : i32
    %1 = arith.extui %0 : i1 to i32
    %c0_i32_0 = arith.constant 0 : i32
    %2 = arith.cmpi ne, %1, %c0_i32_0 : i32
    scf.if %2 {
      %cst_15 = arith.constant 0.000000e+00 : f32
      %34 = vector.broadcast %cst_15 : f32 to vector<1x1xf32>
      %c0_16 = arith.constant 0 : index
      %c0_17 = arith.constant 0 : index
      %35 = vector.load %arg5[%c0_16, %c0_17] : memref<1x1xf32, #tpu.memory_space<vmem>>, vector<1x1xf32>
      tpu.vector_store %arg5[%c0_16, %c0_17], %34 {strides = array<i32>} : memref<1x1xf32, #tpu.memory_space<vmem>>, vector<1x1xf32>,
    } else {
    }
    %c0 = arith.constant 0 : index
    %c0_1 = arith.constant 0 : index
    %3 = vector.load %arg2[%c0, %c0_1] : memref<8x256xf32, #tpu.memory_space<vmem>>, vector<8x256xf32>
    %4 = vector.shape_cast %3 : vector<8x256xf32> to vector<1x8x256xf32>
    %cst = arith.constant 0.000000e+00 : f32
    %5 = vector.broadcast %cst : f32 to vector<1x8x1xf32>
    %6 = vector.extract_strided_slice %4 {offsets = [0, 0, 16], sizes = [1, 8, 240], strides = [1, 1, 1]} : vector<1x8x256xf32> to vector<1x8x240xf32>
    %7 = vector.extract_strided_slice %4 {offsets = [0, 0, 0], sizes = [1, 8, 240], strides = [1, 1, 1]} : vector<1x8x256xf32> to vector<1x8x240xf32>
    %8 = arith.subf %6, %7 : vector<1x8x240xf32>
    %9 = arith.mulf %8, %8 : vector<1x8x240xf32>
    %cst_2 = arith.constant dense<0.000000e+00> : vector<1x8xf32>
    %10 = vector.multi_reduction <add>, %9, %cst_2 [2] : vector<1x8x240xf32> to vector<1x8xf32>
    %11 = vector.shape_cast %10 : vector<1x8xf32> to vector<1x8x1xf32>
    %cst_3 = arith.constant 0.00104166672 : f32
    %12 = vector.broadcast %cst_3 : f32 to vector<1x8x1xf32>
    %13 = arith.mulf %11, %12 : vector<1x8x1xf32>
    %14 = arith.addf %5, %13 : vector<1x8x1xf32>
    %15 = vector.extract_strided_slice %4 {offsets = [0, 0, 1], sizes = [1, 8, 255], strides = [1, 1, 1]} : vector<1x8x256xf32> to vector<1x8x255xf32>
    %16 = vector.extract_strided_slice %4 {offsets = [0, 0, 0], sizes = [1, 8, 255], strides = [1, 1, 1]} : vector<1x8x256xf32> to vector<1x8x255xf32>
    %17 = arith.subf %15, %16 : vector<1x8x255xf32>
    %18 = arith.mulf %17, %17 : vector<1x8x255xf32>
    %c0_4 = arith.constant 0 : index
    %c0_5 = arith.constant 0 : index
    %19 = vector.load %arg3[%c0_4, %c0_5] : memref<8x255xf32, #tpu.memory_space<vmem>>, vector<8x255xf32>
    %20 = vector.shape_cast %19 : vector<8x255xf32> to vector<1x8x255xf32>
    %21 = arith.mulf %18, %20 : vector<1x8x255xf32>
    %cst_6 = arith.constant dense<0.000000e+00> : vector<1x8xf32>
    %22 = vector.multi_reduction <add>, %21, %cst_6 [2] : vector<1x8x255xf32> to vector<1x8xf32>
    %23 = vector.shape_cast %22 : vector<1x8xf32> to vector<1x8x1xf32>
    %24 = arith.addf %14, %23 : vector<1x8x1xf32>
    %c0_7 = arith.constant 0 : index
    %c0_8 = arith.constant 0 : index
    %25 = vector.load %arg5[%c0_7, %c0_8] : memref<1x1xf32, #tpu.memory_space<vmem>>, vector<1x1xf32>
    %cst_9 = arith.constant dense<0.000000e+00> : vector<8x1xf32>
    %26 = vector.multi_reduction <add>, %24, %cst_9 [0] : vector<1x8x1xf32> to vector<8x1xf32>
    %cst_10 = arith.constant dense<0.000000e+00> : vector<1xf32>
    %27 = vector.multi_reduction <add>, %26, %cst_10 [0] : vector<8x1xf32> to vector<1xf32>
    %28 = vector.shape_cast %27 : vector<1xf32> to vector<1x1xf32>
    %29 = arith.addf %25, %28 : vector<1x1xf32>
    %c0_11 = arith.constant 0 : index
    %c0_12 = arith.constant 0 : index
    %30 = vector.load %arg5[%c0_11, %c0_12] : memref<1x1xf32, #tpu.memory_space<vmem>>, vector<1x1xf32>
    tpu.vector_store %arg5[%c0_11, %c0_12], %29 {strides = array<i32>} : memref<1x1xf32, #tpu.memory_space<vmem>>, vector<1x1xf32>,
    %c0_i32_13 = arith.constant 0 : i32
    %31 = arith.cmpi eq, %arg1, %c0_i32_13 : i32
    %32 = arith.extui %31 : i1 to i32
    %c0_i32_14 = arith.constant 0 : i32
    %33 = arith.cmpi ne, %32, %c0_i32_14 : i32
    scf.if %33 {
      %c0_15 = arith.constant 0 : index
      %c0_16 = arith.constant 0 : index
      %34 = vector.load %arg5[%c0_15, %c0_16] : memref<1x1xf32, #tpu.memory_space<vmem>>, vector<1x1xf32>
      %35 = vector.shape_cast %34 : vector<1x1xf32> to vector<1x1x1xf32>
      %c0_17 = arith.constant 0 : index
      %c0_18 = arith.constant 0 : index
      %c0_19 = arith.constant 0 : index
      %36 = vector.load %arg4[%c0_17, %c0_18, %c0_19] : memref<1x1x1xf32, #tpu.memory_space<vmem>>, vector<1x1x1xf32>
      tpu.vector_store %arg4[%c0_17, %c0_18, %c0_19], %35 {strides = array<i32>} : memref<1x1x1xf32, #tpu.memory_space<vmem>>, vector<1x1x1xf32>,
    } else {
    }
    return
  }
  func.func @transform_0(%arg0: i32, %arg1: i32) -> (i32, i32) {
    %c1_i32 = arith.constant 1 : i32
    %0 = arith.muli %arg0, %c1_i32 : i32
    %1 = arith.addi %0, %arg1 : i32
    %c0_i32 = arith.constant 0 : i32
    %c0_i32_0 = arith.constant 0 : i32
    return %1, %c0_i32 : i32, i32
  }
  func.func @transform_1(%arg0: i32, %arg1: i32) -> (i32, i32) {
    %c0_i32 = arith.constant 0 : i32
    %c0_i32_0 = arith.constant 0 : i32
    %c0_i32_1 = arith.constant 0 : i32
    return %c0_i32, %c0_i32_0 : i32, i32
  }
  func.func @transform_2(%arg0: i32, %arg1: i32) -> (i32, i32, i32) {
    %c0_i32 = arith.constant 0 : i32
    %c0_i32_0 = arith.constant 0 : i32
    %c0_i32_1 = arith.constant 0 : i32
    return %arg0, %c0_i32, %c0_i32_0 : i32, i32, i32
  }
}

</mosaic_0001>

<bundles_post_ra>
// kernel: tpu_custom_call.1
= control target key start
LH: loop header
LB: loop body
LE: loop exit
PB: predicated region body
PF: predicated region fallthrough
CT: control target
= control target key end

     0   :  { %7 = vsyncpa [#allocation4], 0  ;;  %s262_s0 = inlined_call_operand.hbm [shape: f32[8,256], index: 0, kind: input, shape index: {}]   ;;  %s263_s1 = inlined_call_operand.hbm [shape: f32[8,255], index: 1, kind: input, shape index: {}]   ;;  %s264_s2 = inlined_call_operand.hbm [shape: f32[1,1,1], index: 2, kind: output, shape index: {}]  }
   0x1   :  { %8 = vsyncpa [#allocation7], 0 }
   0x2   :  { %9 = vsyncpa [#allocation5], 0  ;;  %s225_s9 = smov [#allocation3]   ;;  %s226_s11 = smov [#allocation6]  }
   0x3   :  { %s20_s10 = sshll.u32 %s225_s9, 4  ;;  %s30_s12 = sshll.u32 %s226_s11, 4  ;;  %s21_s10 = int_to_ptr.vmem [resolvable:$true] %s20_s10  ;;  %s31_s12 = int_to_ptr.vmem [resolvable:$true] %s30_s12 }
   0x4   :  { %s167_s13 = scalar_lea.vmem %s21_s10, 256  ;;  %p172_p1 = scmp.lt.s32.totalorder %s21_s10, %s21_s10 }
   0x5   :  { %p168_p0 = scmp.ne.s32.totalorder %s21_s10, %s167_s13  ;;  %p173_p2 = scmp.lt.s32.totalorder %s167_s13, %s167_s13 }
   0x7   :  { %p174_p3 = por %p173_p2, %p172_p1 }
   0x9   :  { %p175_p4 = pnand %p174_p3, %p168_p0 }
   0xb   :  { %178 = shalt.err (!%p175_p4)
}
   0xc   :  { %23 = dma.hbm_to_vmem [thread:$0]  %s262_s0, 256, %s21_s10, [#allocation4]  }
   0xd   :  { %s187_s16 = scalar_lea.vmem %s31_s12, 256  ;;  %p192_p6 = scmp.lt.s32.totalorder %s31_s12, %s31_s12 }
   0xe   :  { %p188_p5 = scmp.ne.s32.totalorder %s31_s12, %s187_s16  ;;  %p193_p7 = scmp.lt.s32.totalorder %s187_s16, %s187_s16 }
  0x10   :  { %p194_p8 = por %p193_p7, %p192_p6 }
  0x12   :  { %p195_p9 = pnand %p194_p8, %p188_p5 }
  0x14   :  { %198 = shalt.err (!%p195_p9)
}
  0x15   :  { %33 = dma.hbm_to_vmem [thread:$0]  %s263_s1, 256, %s31_s12, [#allocation7]  }
  0x16   :  { %219 = dma.done.wait [#allocation4], 256  }
  0x17   :  { %220 = vsyncadd [#allocation4], 4294967040 }
  0x18   :  { %221 = dma.done.wait [#allocation7], 256  }
  0x19   :  { %222 = vsyncadd [#allocation7], 4294967040  ;;  %v47_v0 = vld [vmem:[#allocation3] sm:$0xff]  ;;  %s227_s19 = smov 1   ;;  %s228_s20 = smov 16   ;;  %v48_v1 = vld [vmem:[#allocation3 + $0x8] sm:$0xff] }
  0x1a   :  { %79 = vrot.lane.b32.xlu1 %v47_v0, %s227_s19  ;;  %51 = vrot.lane.b32.xlu0 %v47_v0, %s228_s20  ;;  %v92_v2 = vld [vmem:[#allocation6 + $0x8] sm:$0xff]  ;;  %v91_v3 = vld [vmem:[#allocation6] sm:$0xff]  ;;  %vm83_vm0 = vcmask 7168   ;;  %vm55_vm1 = vcmask 130048   ;;  %s229_s0 = smov 112   ;;  %s230_s1 = smov 127  }
  0x1b   :  { %vm69_vm2 = vcmask 916480   ;;  %vm110_vm3 = vcmask 1039360   ;;  %vm45_vm4 = vcmask 0   ;;  %v231_v33 = vmov 0.0   ;;  %s232_s21 = smov [#allocation8]  }
  0x1c   :  { %46 = vst.msk [vmem:[#allocation2] sm:$0x1] %vm45_vm4, %v231_v33  ;;  %s141_s22 = sshll.u32 %s232_s21, 4  ;;  %s142_s22 = int_to_ptr.vmem [resolvable:$true] %s141_s22 }
  0x1d   :  { %s199_s23 = scalar_lea.vmem %s142_s22, 16  ;;  %s203_s24 = scalar_lea.vmem %s142_s22, 32 }
  0x1e   :  { %81 = vrot.lane.b32.xlu1 %v48_v1, %s227_s19  ;;  %53 = vrot.lane.b32.xlu0 %v48_v1, %s228_s20  ;;  %p200_p10 = scmp.ne.s32.totalorder %s142_s22, %s199_s23  ;;  %p204_p11 = scmp.lt.s32.totalorder %s142_s22, %s142_s22 }
  0x1f   :  { %p205_p12 = scmp.lt.s32.totalorder %s203_s24, %s199_s23 }
  0x21   :  { %p206_p13 = por %p205_p12, %p204_p11 }
  0x22   :  { %97 = vrot.lane.b32.xlu1 %v92_v2, %s227_s19  ;;  %95 = vrot.lane.b32.xlu0 %v91_v3, %s227_s19 }
  0x23   :  { %v119_v43 = vld [vmem:[#allocation2] sm:$0x1]  ;;  %p207_p0 = pnand %p206_p13, %p200_p10 }
  0x8c   :  { %v80_v4 = vpop.permute.xlu1 %79  ;;  %v52_v5 = vpop.permute.xlu0 %51 }
  0x8d   :  { %v59_v6 = vsub.f32 %v47_v0, %v52_v5  ;;  %v87_v7 = vsub.f32 %v47_v0, %v80_v4 }
  0x8f   :  { %v61_v8 = vmul.f32 %v59_v6, %v59_v6  ;;  %v89_v15 = vmul.f32 %v87_v7, %v87_v7 }
  0x90   :  { %v82_v9 = vpop.permute.xlu1 %81  ;;  %v54_v10 = vpop.permute.xlu0 %53 }
  0x91   :  { %v84_v11 = vsel %vm83_vm0, %v80_v4, %v82_v9  ;;  %v56_v12 = vsel %vm55_vm1, %v52_v5, %v54_v10  ;;  %65 = vrot.lane.b32.xlu0 %v61_v8, %s229_s0 }
  0x92   :  { %v88_v13 = vsub.f32 %v48_v1, %v84_v11  ;;  %v60_v14 = vsub.f32 %v48_v1, %v56_v12 }
  0x94   :  { %v90_v16 = vmul.f32 %v88_v13, %v88_v13  ;;  %v62_v17 = vmul.f32 %v60_v14, %v60_v14  ;;  %v98_v18 = vpop.permute.xlu1 %97  ;;  %v96_v19 = vpop.permute.xlu0 %95 }
  0x95   :  { %v99_v20 = vsel %vm83_vm0, %v96_v19, %v98_v18  ;;  %v102_v21 = vmul.f32 %v96_v19, %v89_v15 }
  0x96   :  { %67 = vrot.lane.b32.xlu1 %v62_v17, %s229_s0  ;;  %v103_v22 = vmul.f32 %v99_v20, %v90_v16 }
  0x97   :  { %106 = vrot.lane.b32.xlu0 %v102_v21, %s230_s1 }
  0x9a   :  { %108 = vrot.lane.b32.xlu1 %v103_v22, %s230_s1 }
 0x103   :  { %v66_v23 = vpop.permute.xlu0 %65 }
 0x108   :  { %v68_v24 = vpop.permute.xlu1 %67 }
 0x109   :  { %v70_v25 = vsel %vm69_vm2, %v66_v23, %v68_v24  ;;  %v73_v26 = vsel %vm69_vm2, %v68_v24, 0.0  ;;  %v107_v28 = vpop.permute.xlu0 %106 }
 0x10a   :  { %v74_v27 = vadd.f32 %v73_v26, %v70_v25 }
 0x10c   :  { %v109_v29 = vpop.permute.xlu1 %108  ;;  %75 = vadd.xlane.f32.xlu0 %v74_v27 }
 0x10d   :  { %v111_v30 = vsel %vm110_vm3, %v107_v28, %v109_v29  ;;  %v114_v31 = vsel %vm110_vm3, %v109_v29, 0.0 }
 0x10e   :  { %v115_v32 = vadd.f32 %v114_v31, %v111_v30 }
 0x110   :  { %116 = vadd.xlane.f32.xlu1 %v115_v32 }
 0x195   :  { %v76_v34 = vpop.xlane.xlu0 %75 }
 0x196   :  { %v77_v35 = vmul.f32 0.0010416667, %v76_v34 }
 0x199   :  { %v117_v36 = vpop.xlane.xlu1 %116 }
 0x19a   :  { %v118_v37 = vadd.f32 %v117_v36, %v77_v35 }
 0x19c   :  { %v121_v38 = vrot.slane %v118_v37, 4 }
 0x19e   :  { %v122_v39 = vadd.f32 %v121_v38, %v118_v37 }
 0x1a0   :  { %v123_v40 = vrot.slane %v122_v39, 2 }
 0x1a2   :  { %v124_v41 = vadd.f32 %v123_v40, %v122_v39 }
 0x1a4   :  { %v125_v42 = vrot.slane %v124_v41, 1 }
 0x1a6   :  { %v126_v44 = vadd.f32 %v125_v42, %v124_v41 }
 0x1a8   :  { %v127_v45 = vadd.f32 %v126_v44, %v119_v43 }
 0x1aa   :  { %129 = vst.msk [vmem:[#allocation2] sm:$0x1] %vm45_vm4, %v127_v45 }
 0x1b1   :  { %v133_v46 = vld [vmem:[#allocation2] sm:$0x1] }
 0x1b2   :  { %134 = vst.msk [vmem:[#allocation8] sm:$0x1] %vm45_vm4, %v133_v46 }
 0x1b3   :  { %210 = shalt.err (!%p207_p0)
}
 0x1b4   :  { %144 = dma.vmem_to_hbm [thread:$0]  %s142_s22, 16, %s264_s2, [#allocation5]  }
 0x1b5   :  { %223 = dma.done.wait [#allocation5], 16  }
 0x1b6   :  { %224 = vsyncadd [#allocation5], 4294967280 }
 0x1b7   :  { %148 = vsyncpa [#allocation4], 1 }
 0x1b8   :  { %149 = vsyncpa [#allocation7], 1 }
 0x1b9   :  { %150 = vsyncpa [#allocation5], 1 }

</bundles_post_ra>
